<compile_context>
chip_gen: v5e
topology: v5e:2x2
jax: 0.10.0
libtpu: 0.0.40
codegen_flags: <defaults>
</compile_context>

<pallas_src>
import jax
import jax.numpy as jnp
from jax.experimental import pallas as pl
from jax.experimental.pallas import tpu as pltpu

IN_FEATS, H1, H2, OUT_FEATS = 93, 46, 18, 9


def _round_up(n, m):
    return ((n + m - 1) // m) * m


def _pick_tile(batch, tile_b):
    """Number-of-tiles-first tile sizing: avoids up-to-2x padded rows for
    batches just above tile_b, while keeping the sublane dim a multiple of 8."""
    ntiles = pl.cdiv(_round_up(batch, 8), tile_b)
    return _round_up(pl.cdiv(batch, ntiles), 8)


def mlp_kernel(x_ref, w1_ref, b1_ref, w2_ref, b2_ref, w3_ref, b3_ref, o_ref):
    # x tile: (tile, 93) f32 -> cast to bf16 in-kernel (VPU, cheap).
    # Weights: bf16, VMEM-resident across the whole grid (constant index_map).
    # Biases: f32. All dots accumulate in f32 on the MXU; epilogues stay f32.
    x = x_ref[...].astype(jnp.bfloat16)

    h1 = jnp.dot(x, w1_ref[...], preferred_element_type=jnp.float32) + b1_ref[...]
    h1 = jnp.maximum(h1, 0.0)                                        # ReLU (f32)

    h2 = jnp.dot(h1.astype(jnp.bfloat16), w2_ref[...],
                 preferred_element_type=jnp.float32) + b2_ref[...]
    h2 = jnp.maximum(h2, 0.0)                                        # ReLU (f32)

    h3 = jnp.dot(h2.astype(jnp.bfloat16), w3_ref[...],
                 preferred_element_type=jnp.float32) + b3_ref[...]
    o_ref[...] = h3.astype(o_ref.dtype)                              # (tile, 9) f32 store


def net_forward(x, kernel_params, *, tile_b=1024, core_parallel=False):
    """x: (B, 93) f32.  kernel_params: bf16 weights / f32 biases (see prepare_params).

    Set core_parallel=True on v7x (2 TensorCores) when the batch grid has >= 2
    tiles to shard the batch axis across both cores (CORE_PARALLEL semantics).
    """
    w1, b1, w2, b2, w3, b3 = kernel_params
    B, F = x.shape
    assert F == IN_FEATS

    tile = _pick_tile(B, tile_b)
    grid = pl.cdiv(B, tile)

    # Full-shape, grid-invariant blocks for the (tiny) weights and biases.
    const = lambda a: pl.BlockSpec(a.shape, lambda i, _n=a.ndim: (0,) * _n)

    flops = 2 * B * (IN_FEATS * H1 + H1 * H2 + H2 * OUT_FEATS)
    param_bytes = sum(int(p.size) * p.dtype.itemsize for p in kernel_params)
    bytes_accessed = B * IN_FEATS * 4 + B * OUT_FEATS * 4 + param_bytes

    sem = pltpu.CORE_PARALLEL if core_parallel else pltpu.PARALLEL

    out = pl.pallas_call(
        mlp_kernel,
        out_shape=jax.ShapeDtypeStruct((B, OUT_FEATS), jnp.float32),
        grid=(grid,),
        in_specs=[
            pl.BlockSpec((tile, IN_FEATS), lambda i: (i, 0)),   # x: tiled over batch
            const(w1), const(b1),                               # weights/biases: resident
            const(w2), const(b2),
            const(w3), const(b3),
        ],
        out_specs=pl.BlockSpec((tile, OUT_FEATS), lambda i: (i, 0)),
        compiler_params=pltpu.CompilerParams(dimension_semantics=(sem,)),
        cost_estimate=pl.CostEstimate(flops=flops, transcendentals=0,
                                      bytes_accessed=bytes_accessed),
    )(x, w1, b1, w2, b2, w3, b3)
    return out


def init_params(key):
    """f32 params matching the PyTorch layer shapes (weights stored (in, out))."""
    dims = [(IN_FEATS, H1), (H1, H2), (H2, OUT_FEATS)]
    params = []
    for din, dout in dims:
        key, kw, kb = jax.random.split(key, 3)
        bound = 1.0 / (din ** 0.5)  # torch default Linear init range
        w = jax.random.uniform(kw, (din, dout), jnp.float32, -bound, bound)
        b = jax.random.uniform(kb, (dout,), jnp.float32, -bound, bound)
        params.extend([w, b.reshape(1, dout)])  # keep bias 2-D for TPU layout
    return tuple(params)


def prepare_params(params_f32):
    """Weights -> bf16 (MXU operands); biases stay f32. No padding anywhere."""
    w1, b1, w2, b2, w3, b3 = params_f32
    bf = lambda a: a.astype(jnp.bfloat16)
    return (bf(w1), b1, bf(w2), b2, bf(w3), b3)


def reference_forward(x, params_f32):
    """Same math (bf16 MXU operands, f32 accumulation/epilogue), plain XLA."""
    w1, b1, w2, b2, w3, b3 = params_f32
    bf = lambda a: a.astype(jnp.bfloat16)
    h = jnp.maximum(jnp.dot(bf(x), bf(w1), preferred_element_type=jnp.float32) + b1, 0.0)
    h = jnp.maximum(jnp.dot(bf(h), bf(w2), preferred_element_type=jnp.float32) + b2, 0.0)
    return jnp.dot(bf(h), bf(w3), preferred_element_type=jnp.float32) + b3


if __name__ == "__main__":
    key = jax.random.PRNGKey(0)
    kx, kx2, kp = jax.random.split(key, 3)

    params_f32 = init_params(kp)
    kernel_params = prepare_params(params_f32)

    # Small batch (single tile, B not a multiple of the tile -> masked store path).
    B = 8
    x = jax.random.normal(kx, (B, 93), jnp.float32)
    out = jax.block_until_ready(net_forward(x, kernel_params))
    ref = reference_forward(x, params_f32)
    assert out.shape == (B, 9)
    assert jnp.allclose(out, ref, atol=2e-3, rtol=2e-3), "mismatch vs reference (B=8)"

    # Multi-tile grid with a ragged last tile (tile_b=128 -> 3 tiles of 104 rows).
    B2 = 300
    x2 = jax.random.normal(kx2, (B2, 93), jnp.float32)
    out2 = jax.block_until_ready(net_forward(x2, kernel_params, tile_b=128))
    ref2 = reference_forward(x2, params_f32)
    assert out2.shape == (B2, 9)
    assert jnp.allclose(out2, ref2, atol=2e-3, rtol=2e-3), "mismatch vs reference (B=300)"

    print("KERNEL_OK")
</pallas_src>

<mosaic_0001>
module attributes {stable_mosaic.version = 11 : i64} {
  func.func @mlp_kernel(%arg0: i32, %arg1: memref<8x93xf32, #tpu.memory_space<vmem>>, %arg2: memref<93x46xbf16, #tpu.memory_space<vmem>>, %arg3: memref<1x46xf32, #tpu.memory_space<vmem>>, %arg4: memref<46x18xbf16, #tpu.memory_space<vmem>>, %arg5: memref<1x18xf32, #tpu.memory_space<vmem>>, %arg6: memref<18x9xbf16, #tpu.memory_space<vmem>>, %arg7: memref<1x9xf32, #tpu.memory_space<vmem>>, %arg8: memref<8x9xf32, #tpu.memory_space<vmem>>) attributes {dimension_semantics = [#tpu.dimension_semantics<parallel>], iteration_bounds = array<i64: 1>, scalar_prefetch = 0 : i64, scratch_operands = 0 : i64, tpu.core_type = #tpu.core_type<tc>, window_params = [{transform_indices = @transform_0, window_bounds = array<i64: 8, 93>}, {pipeline_mode = #tpu.pipeline_mode<synchronous>, transform_indices = @transform_1, window_bounds = array<i64: 93, 46>}, {pipeline_mode = #tpu.pipeline_mode<synchronous>, transform_indices = @transform_2, window_bounds = array<i64: 1, 46>}, {pipeline_mode = #tpu.pipeline_mode<synchronous>, transform_indices = @transform_3, window_bounds = array<i64: 46, 18>}, {pipeline_mode = #tpu.pipeline_mode<synchronous>, transform_indices = @transform_4, window_bounds = array<i64: 1, 18>}, {pipeline_mode = #tpu.pipeline_mode<synchronous>, transform_indices = @transform_5, window_bounds = array<i64: 18, 9>}, {pipeline_mode = #tpu.pipeline_mode<synchronous>, transform_indices = @transform_6, window_bounds = array<i64: 1, 9>}, {transform_indices = @transform_7, window_bounds = array<i64: 8, 9>}]} {
    %c0 = arith.constant 0 : index
    %c0_0 = arith.constant 0 : index
    %0 = vector.load %arg1[%c0, %c0_0] : memref<8x93xf32, #tpu.memory_space<vmem>>, vector<8x93xf32>
    %1 = arith.truncf %0 : vector<8x93xf32> to vector<8x93xbf16>
    %c0_1 = arith.constant 0 : index
    %c0_2 = arith.constant 0 : index
    %2 = vector.load %arg2[%c0_1, %c0_2] : memref<93x46xbf16, #tpu.memory_space<vmem>>, vector<93x46xbf16>
    %cst = arith.constant dense<0.000000e+00> : vector<8x46xf32>
    %3 = tpu.matmul %1, %2, %cst {dimension_numbers = #tpu.dot_dimension_numbers<[1], [0], [0], [1], [0, 0, 1, 1], [], []>} : vector<8x93xbf16>, vector<93x46xbf16>, vector<8x46xf32> -> vector<8x46xf32>
    %c0_3 = arith.constant 0 : index
    %c0_4 = arith.constant 0 : index
    %4 = vector.load %arg3[%c0_3, %c0_4] : memref<1x46xf32, #tpu.memory_space<vmem>>, vector<1x46xf32>
    %5 = vector.broadcast %4 : vector<1x46xf32> to vector<8x46xf32>
    %6 = arith.addf %3, %5 : vector<8x46xf32>
    %cst_5 = arith.constant 0.000000e+00 : f32
    %7 = vector.broadcast %cst_5 : f32 to vector<8x46xf32>
    %8 = arith.maximumf %6, %7 : vector<8x46xf32>
    %9 = arith.truncf %8 : vector<8x46xf32> to vector<8x46xbf16>
    %c0_6 = arith.constant 0 : index
    %c0_7 = arith.constant 0 : index
    %10 = vector.load %arg4[%c0_6, %c0_7] : memref<46x18xbf16, #tpu.memory_space<vmem>>, vector<46x18xbf16>
    %cst_8 = arith.constant dense<0.000000e+00> : vector<8x18xf32>
    %11 = tpu.matmul %9, %10, %cst_8 {dimension_numbers = #tpu.dot_dimension_numbers<[1], [0], [0], [1], [0, 0, 1, 1], [], []>} : vector<8x46xbf16>, vector<46x18xbf16>, vector<8x18xf32> -> vector<8x18xf32>
    %c0_9 = arith.constant 0 : index
    %c0_10 = arith.constant 0 : index
    %12 = vector.load %arg5[%c0_9, %c0_10] : memref<1x18xf32, #tpu.memory_space<vmem>>, vector<1x18xf32>
    %13 = vector.broadcast %12 : vector<1x18xf32> to vector<8x18xf32>
    %14 = arith.addf %11, %13 : vector<8x18xf32>
    %cst_11 = arith.constant 0.000000e+00 : f32
    %15 = vector.broadcast %cst_11 : f32 to vector<8x18xf32>
    %16 = arith.maximumf %14, %15 : vector<8x18xf32>
    %17 = arith.truncf %16 : vector<8x18xf32> to vector<8x18xbf16>
    %c0_12 = arith.constant 0 : index
    %c0_13 = arith.constant 0 : index
    %18 = vector.load %arg6[%c0_12, %c0_13] : memref<18x9xbf16, #tpu.memory_space<vmem>>, vector<18x9xbf16>
    %cst_14 = arith.constant dense<0.000000e+00> : vector<8x9xf32>
    %19 = tpu.matmul %17, %18, %cst_14 {dimension_numbers = #tpu.dot_dimension_numbers<[1], [0], [0], [1], [0, 0, 1, 1], [], []>} : vector<8x18xbf16>, vector<18x9xbf16>, vector<8x9xf32> -> vector<8x9xf32>
    %c0_15 = arith.constant 0 : index
    %c0_16 = arith.constant 0 : index
    %20 = vector.load %arg7[%c0_15, %c0_16] : memref<1x9xf32, #tpu.memory_space<vmem>>, vector<1x9xf32>
    %21 = vector.broadcast %20 : vector<1x9xf32> to vector<8x9xf32>
    %22 = arith.addf %19, %21 : vector<8x9xf32>
    %c0_17 = arith.constant 0 : index
    %c0_18 = arith.constant 0 : index
    %23 = vector.load %arg8[%c0_17, %c0_18] : memref<8x9xf32, #tpu.memory_space<vmem>>, vector<8x9xf32>
    tpu.vector_store %arg8[%c0_17, %c0_18], %22 {strides = array<i32>} : memref<8x9xf32, #tpu.memory_space<vmem>>, vector<8x9xf32>,
    return
  }
  func.func @transform_0(%arg0: i32) -> (i32, i32) {
    %c0_i32 = arith.constant 0 : i32
    %c0_i32_0 = arith.constant 0 : i32
    return %arg0, %c0_i32 : i32, i32
  }
  func.func @transform_1(%arg0: i32) -> (i32, i32) {
    %c0_i32 = arith.constant 0 : i32
    %c0_i32_0 = arith.constant 0 : i32
    %c0_i32_1 = arith.constant 0 : i32
    return %c0_i32, %c0_i32_0 : i32, i32
  }
  func.func @transform_2(%arg0: i32) -> (i32, i32) {
    %c0_i32 = arith.constant 0 : i32
    %c0_i32_0 = arith.constant 0 : i32
    %c0_i32_1 = arith.constant 0 : i32
    return %c0_i32, %c0_i32_0 : i32, i32
  }
  func.func @transform_3(%arg0: i32) -> (i32, i32) {
    %c0_i32 = arith.constant 0 : i32
    %c0_i32_0 = arith.constant 0 : i32
    %c0_i32_1 = arith.constant 0 : i32
    return %c0_i32, %c0_i32_0 : i32, i32
  }
  func.func @transform_4(%arg0: i32) -> (i32, i32) {
    %c0_i32 = arith.constant 0 : i32
    %c0_i32_0 = arith.constant 0 : i32
    %c0_i32_1 = arith.constant 0 : i32
    return %c0_i32, %c0_i32_0 : i32, i32
  }
  func.func @transform_5(%arg0: i32) -> (i32, i32) {
    %c0_i32 = arith.constant 0 : i32
    %c0_i32_0 = arith.constant 0 : i32
    %c0_i32_1 = arith.constant 0 : i32
    return %c0_i32, %c0_i32_0 : i32, i32
  }
  func.func @transform_6(%arg0: i32) -> (i32, i32) {
    %c0_i32 = arith.constant 0 : i32
    %c0_i32_0 = arith.constant 0 : i32
    %c0_i32_1 = arith.constant 0 : i32
    return %c0_i32, %c0_i32_0 : i32, i32
  }
  func.func @transform_7(%arg0: i32) -> (i32, i32) {
    %c0_i32 = arith.constant 0 : i32
    %c0_i32_0 = arith.constant 0 : i32
    return %arg0, %c0_i32 : i32, i32
  }
}

</mosaic_0001>

<bundles_post_ra>
// kernel: tpu_custom_call.1
= control target key start
LH: loop header
LB: loop body
LE: loop exit
PB: predicated region body
PF: predicated region fallthrough
CT: control target
= control target key end

     0   :  { %vm85_vm0 = vcmask 1045504   ;;  %vm86_vm1 = vcmask 1046528   ;;  %v295_v3 = vmov 65535   ;;  %s391_s0 = inlined_call_operand.vmem [shape: f32[8,93], index: 0, kind: input, shape index: {}]   ;;  %s392_s1 = inlined_call_operand.vmem [shape: bf16[93,46], index: 1, kind: input, shape index: {}]   ;;  %s393_s2 = inlined_call_operand.vmem [shape: f32[1,46], index: 2, kind: input, shape index: {}]   ;;  %s394_s3 = inlined_call_operand.vmem [shape: bf16[46,18], index: 3, kind: input, shape index: {}]   ;;  %s395_s4 = inlined_call_operand.vmem [shape: f32[1,18], index: 4, kind: input, shape index: {}]   ;;  %s396_s5 = inlined_call_operand.vmem [shape: bf16[18,9], index: 5, kind: input, shape index: {}]   ;;  %s397_s6 = inlined_call_operand.vmem [shape: f32[1,9], index: 6, kind: input, shape index: {}]   ;;  %s398_s7 = inlined_call_operand.hbm [shape: f32[8,9], index: 7, kind: output, shape index: {}]  }
   0x1   :  { %v233_v0 = vld [vmem:[%s392_s1 + $0x28] sm:$0xf]  ;;  %v259_v1 = vld [vmem:[%s392_s1 + $0x28] sm:$0x70]  ;;  %v87_v4 = vsel %vm85_vm0, 4294967295, %v295_v3 }
   0x2   :  { %v234_v2 = vor.u32 %v259_v1, %v233_v0  ;;  %v88_v5 = vsel %vm86_vm1, %v87_v4, 0  ;;  %v246_v6 = vld [vmem:[%s394_s3 + $0x10] sm:$0xf]  ;;  %v262_v7 = vld [vmem:[%s394_s3 + $0x10] sm:$0x70] }
   0x3   :  { %v247_v9 = vor.u32 %v262_v7, %v246_v6 }
   0x4   :  { %v90_v8 = vand.u32 %v234_v2, %v88_v5 }
   0x5   :  { %12 = vsyncpa [#allocation3], 0  ;;  %v258_v10 = vld [vmem:[%s392_s1 + $0x20] sm:$0xff]  ;;  %v139_v11 = vsel %vm86_vm1, %v247_v9, 0  ;;  %v257_v12 = vld [vmem:[%s392_s1 + $0x18] sm:$0xff]  ;;  %vm81_vm2 = vcmask 760832  }
   0x6   :  { %94 = vmatpush.bf16.msra.mxu0 %v90_v8  ;;  %146 = vmatpush.bf16.msra.mxu1 %v139_v11  ;;  %v256_v13 = vld [vmem:[%s392_s1 + $0x10] sm:$0xff]  ;;  %v255_v14 = vld [vmem:[%s392_s1 + $0x8] sm:$0xff]  ;;  %v254_v15 = vld [vmem:[%s392_s1] sm:$0xff]  ;;  %vm134_vm3 = vcmask 375808   ;;  %vm176_vm4 = vcmask 1040384   ;;  %vm172_vm5 = vcmask 146432  }
   0x7   :  { %v28_v16 = vld [vmem:[%s391_s0] sm:$0xff]  ;;  %v261_v18 = vld [vmem:[%s394_s3 + $0x8] sm:$0xff]  ;;  %s296_s8 = smov [#allocation2]   ;;  %s202_s11 = sshll.u32 %s398_s7, 4  ;;  %vm193_vm6 = vcmask 72704   ;;  %s203_s11 = int_to_ptr.hbm [resolvable:$true] %s202_s11 }
   0x8   :  { %v29_v17 = vpack.c.bf16 %v28_v16, %v28_v16  ;;  %v260_v19 = vld [vmem:[%s394_s3] sm:$0xff]  ;;  %v158_v26 = vld [vmem:[%s396_s5 + $0x8] sm:$0x1]  ;;  %s200_s9 = sshll.u32 %s296_s8, 4  ;;  %s201_s9 = int_to_ptr.vmem [resolvable:$true] %s200_s9 }
   0x9   :  { %v266_v20 = vld [vmem:[%s393_s2] ss:$0 sm:$0xff]  ;;  %v168_v27 = vunpack.c.l.b16 %v158_v26 }
   0xa   :  { %95 = vmatpush.bf16.msra.mxu0 %v258_v10  ;;  %147 = vmatpush.bf16.msra.mxu1 %v261_v18  ;;  %v263_v30 = vld [vmem:[%s396_s5] sm:$0xff] }
   0xb   :  { %v170_v28 = vpack.c.b16 %v168_v27, %v168_v27  ;;  %v267_v31 = vld [vmem:[%s395_s4] ss:$0 sm:$0xff] }
   0xc   :  { %v268_v37 = vld [vmem:[%s397_s6] ss:$0 sm:$0xff] }
   0xd   :  { %v178_v29 = vsel %vm176_vm4, %v170_v28, 0 }
   0xe   :  { %96 = vmatpush.bf16.msra.mxu0 %v257_v12  ;;  %148 = vmatpush.bf16.msra.mxu1 %v260_v19 }
   0xf   :  { %186 = vmatpush.bf16.msra.mxu2 %v178_v29 }
  0x12   :  { %97 = vmatpush.bf16.msra.mxu0 %v256_v13 }
  0x13   :  { %187 = vmatpush.bf16.msra.mxu2 %v263_v30 }
  0x16   :  { %98 = vmatpush.bf16.msra.mxu0 %v255_v14 }
  0x1a   :  { %99 = vmatpush.bf16.msra.mxu0 %v254_v15 }
  0x1d   :  { %235 = vmatmul.msk.bf16.vlgmr.msra.gmra.mxu0 %vm81_vm2, %v29_v17 }
  0x9a   :  { %v101_v21 = vpop.f32.mrf.mxu0 }
  0x9b   :  { %v102_v22 = vadd.f32 %v266_v20, %v101_v21 }
  0x9d   :  { %v105_v23 = vmax.f32 %v102_v22, 0.0 }
  0x9f   :  { %v106_v24 = vpack.c.bf16 %v105_v23, %v105_v23 }
  0xa1   :  { %248 = vmatmul.msk.bf16.vlgmr.msra.gmra.mxu1 %vm134_vm3, %v106_v24 }
  0xa2   :  { %v103_v25 = vpop.f32.mrf.mxu0 }
 0x11e   :  { %v150_v32 = vpop.f32.mrf.mxu1 }
 0x11f   :  { %v151_v33 = vadd.f32 %v267_v31, %v150_v32 }
 0x121   :  { %v154_v34 = vmax.f32 %v151_v33, 0.0 }
 0x123   :  { %v155_v35 = vpack.c.bf16 %v154_v34, %v154_v34 }
 0x125   :  { %253 = vmatmul.msk.bf16.vlgmr.msra.gmra.mxu2 %vm172_vm5, %v155_v35 }
 0x126   :  { %v152_v36 = vpop.f32.mrf.mxu1 }
 0x1a8   :  { %v189_v38 = vpop.f32.mrf.mxu2 }
 0x1a9   :  { %v190_v39 = vadd.f32 %v268_v37, %v189_v38 }
 0x1ab   :  { %194 = vst.msk [vmem:[#allocation2] sm:$0xff] %vm193_vm6, %v190_v39 }
 0x1ac   :  { %205 = dma.vmem_to_hbm [thread:$0]  %s201_s9, 128, %s203_s11, [#allocation3]  }
 0x1b0   :  { %v191_v40 = vpop.f32.mrf.mxu2 }
 0x1b1   :  { %293 = dma.done.wait [#allocation3], 128  }
 0x1b2   :  { %294 = vsyncadd [#allocation3], 4294967168 }
 0x1b3   :  { %210 = vsyncpa [#allocation3], 1 }

</bundles_post_ra>
